<compile_context>
chip_gen: v7x
topology: tpu7x:2x2x1
jax: 0.10.0
libtpu: 0.0.40
codegen_flags: <defaults>
</compile_context>

<pallas_src>
import jax
import jax.numpy as jnp
from jax.experimental import pallas as pl
from jax.experimental.pallas import tpu as pltpu


def _round_up(x, m):
    return ((x + m - 1) // m) * m


def _mlp_tanh_kernel(x_ref, w1_ref, b1_ref, w2_ref, b2_ref, o_ref, acc_ref, h_ref):
    """One grid step of Linear -> tanh -> Linear.

    grid = (row_tiles, out_tiles, h_tiles); axis 2 (h) is the fc2 reduction axis.
    """
    j = pl.program_id(1)              # out_dim tile index
    k = pl.program_id(2)              # h_dim tile index (fc2 K reduction)
    tile_h = w1_ref.shape[1]

    @pl.when(k == 0)
    def _init_acc():
        acc_ref[...] = jnp.zeros_like(acc_ref)

    # fc1 + tanh for this h-tile. Only computed on the first out-dim tile (j == 0);
    # cached in VMEM scratch and reused for j > 0 (saves the fc1 flops per out tile).
    @pl.when(j == 0)
    def _compute_h_tile():
        h = jnp.dot(x_ref[...], w1_ref[...], preferred_element_type=jnp.float32)
        h = jnp.tanh(h + b1_ref[...])                    # bias + act in f32
        start = pl.multiple_of(k * tile_h, tile_h)
        h_ref[:, pl.ds(start, tile_h)] = h.astype(h_ref.dtype)

    start = pl.multiple_of(k * tile_h, tile_h)
    h_k = h_ref[:, pl.ds(start, tile_h)]                 # (tile_rows, tile_h), compute dtype
    acc_ref[...] += jnp.dot(h_k, w2_ref[...], preferred_element_type=jnp.float32)

    @pl.when(k == pl.num_programs(2) - 1)
    def _finalize():
        o_ref[...] = (acc_ref[...] + b2_ref[...]).astype(o_ref.dtype)


def clip_project_forward(x, w1, b1, w2, b2, *, compute_dtype=jnp.bfloat16,
                         tile_rows=256, tile_h=512, tile_n=512):
    """MLP((in_dim, hidden, out_dim)) with Tanh between the Linear layers.

    x : (B, in_dim) image features; w1: (in_dim, h_dim); b1: (h_dim,);
    w2: (h_dim, out_dim); b2: (out_dim,).  Returns (B, out_dim) in x.dtype.
    """
    B, in_dim = x.shape
    h_dim = w1.shape[1]
    out_dim = w2.shape[1]
    out_dtype = x.dtype

    # ---- tile selection (128-lane / 8-sublane aligned, clamped to problem size) ----
    tile_rows = min(tile_rows, _round_up(B, 8))
    tile_h = min(tile_h, _round_up(h_dim, 128))
    tile_n = min(tile_n, _round_up(out_dim, 128))

    rows_p = _round_up(B, tile_rows)
    in_p = _round_up(in_dim, 128)
    h_p = _round_up(h_dim, tile_h)
    n_p = _round_up(out_dim, tile_n)

    # ---- zero-pad operands (zeros do not change the result; pad rows are sliced off) ----
    xp = jnp.zeros((rows_p, in_p), compute_dtype).at[:B, :in_dim].set(x.astype(compute_dtype))
    w1p = jnp.zeros((in_p, h_p), compute_dtype).at[:in_dim, :h_dim].set(w1.astype(compute_dtype))
    b1p = jnp.zeros((1, h_p), jnp.float32).at[0, :h_dim].set(b1.astype(jnp.float32))
    w2p = jnp.zeros((h_p, n_p), compute_dtype).at[:h_dim, :out_dim].set(w2.astype(compute_dtype))
    b2p = jnp.zeros((1, n_p), jnp.float32).at[0, :out_dim].set(b2.astype(jnp.float32))

    grid = (rows_p // tile_rows, n_p // tile_n, h_p // tile_h)

    # ---- explicit VMEM budget: 2x double-buffered blocks + scratch + margin ----
    itm = jnp.dtype(compute_dtype).itemsize
    out_itm = jnp.dtype(out_dtype).itemsize
    blk_bytes = (tile_rows * in_p * itm        # x block
                 + in_p * tile_h * itm         # w1 block
                 + tile_h * 4                  # b1 block
                 + tile_h * tile_n * itm       # w2 block
                 + tile_n * 4                  # b2 block
                 + tile_rows * tile_n * out_itm)  # out block
    scratch_bytes = tile_rows * tile_n * 4 + tile_rows * h_p * itm
    vmem_limit = int(min(max(2 * blk_bytes + scratch_bytes + (4 << 20), 32 << 20), 64 << 20))

    out_p = pl.pallas_call(
        _mlp_tanh_kernel,
        out_shape=jax.ShapeDtypeStruct((rows_p, n_p), out_dtype),
        grid_spec=pltpu.PrefetchScalarGridSpec(
            num_scalar_prefetch=0,
            grid=grid,
            in_specs=[
                pl.BlockSpec((tile_rows, in_p), lambda i, j, k: (i, 0)),   # x row tile
                pl.BlockSpec((in_p, tile_h), lambda i, j, k: (0, k)),      # w1 h-tile
                pl.BlockSpec((1, tile_h), lambda i, j, k: (0, k)),         # b1 h-tile
                pl.BlockSpec((tile_h, tile_n), lambda i, j, k: (k, j)),    # w2 (k, n)-tile
                pl.BlockSpec((1, tile_n), lambda i, j, k: (0, j)),         # b2 n-tile
            ],
            out_specs=pl.BlockSpec((tile_rows, tile_n), lambda i, j, k: (i, j)),
            scratch_shapes=[
                pltpu.VMEM((tile_rows, tile_n), jnp.float32),   # fc2 accumulator
                pltpu.VMEM((tile_rows, h_p), compute_dtype),    # cached tanh(fc1) for this row tile
            ],
        ),
        compiler_params=pltpu.CompilerParams(
            # out-dim axis must stay "arbitrary": j > 0 reuses the h cache filled at j == 0.
            dimension_semantics=("parallel", "arbitrary", "arbitrary"),
            vmem_limit_bytes=vmem_limit,
        ),
    )(xp, w1p, b1p, w2p, b2p)

    return out_p[:B, :out_dim]


def clipcap_prefix_tokens(image_feats, w1, b1, w2, b2, nb_prefix_tokens, **kwargs):
    """ClipCap: prompts = clip_project(image_feats).view(B, nb_prefix_tokens, -1)."""
    out = clip_project_forward(image_feats, w1, b1, w2, b2, **kwargs)
    return out.reshape(image_feats.shape[0], nb_prefix_tokens, -1)


def _reference(x, w1, b1, w2, b2):
    h = jnp.tanh(x @ w1 + b1)
    return h @ w2 + b2


if __name__ == "__main__":
    # Small shapes consistent with ClipCapModel.clip_project:
    #   input_dim = clip_prefix_size
    #   hidden    = gpt_embedding_size * nb_prefix_tokens // 2
    #   output    = gpt_embedding_size * nb_prefix_tokens
    B = 4
    clip_prefix_size = 128
    nb_prefix_tokens = 8
    gpt_embedding_size = 64
    hidden_dim = gpt_embedding_size * nb_prefix_tokens // 2   # 256
    output_dim = gpt_embedding_size * nb_prefix_tokens        # 512

    key = jax.random.PRNGKey(0)
    kx, k1, kb1, k2, kb2 = jax.random.split(key, 5)
    x = jax.random.normal(kx, (B, clip_prefix_size), jnp.float32)
    lim1 = 1.0 / (clip_prefix_size ** 0.5)
    lim2 = 1.0 / (hidden_dim ** 0.5)
    w1 = jax.random.uniform(k1, (clip_prefix_size, hidden_dim), jnp.float32, -lim1, lim1)
    b1 = jax.random.uniform(kb1, (hidden_dim,), jnp.float32, -lim1, lim1)
    w2 = jax.random.uniform(k2, (hidden_dim, output_dim), jnp.float32, -lim2, lim2)
    b2 = jax.random.uniform(kb2, (output_dim,), jnp.float32, -lim2, lim2)

    ref = _reference(x, w1, b1, w2, b2).reshape(B, nb_prefix_tokens, gpt_embedding_size)

    # 1) f32 compute, forced small tiles -> exercises row padding + n/h tiling + k accumulation.
    out_f32 = clipcap_prefix_tokens(x, w1, b1, w2, b2, nb_prefix_tokens,
                                    compute_dtype=jnp.float32,
                                    tile_rows=8, tile_h=128, tile_n=128)
    out_f32 = jax.block_until_ready(out_f32)
    assert out_f32.shape == (B, nb_prefix_tokens, gpt_embedding_size)
    assert jnp.allclose(out_f32, ref, atol=5e-4, rtol=5e-4), "f32 tiled kernel mismatch"

    # 2) bf16 compute (v6e/v7x-friendly), default large tiles -> single resident block path.
    out_bf16 = clipcap_prefix_tokens(x, w1, b1, w2, b2, nb_prefix_tokens)
    out_bf16 = jax.block_until_ready(out_bf16)
    assert jnp.allclose(out_bf16, ref, atol=3e-2, rtol=3e-2), "bf16 kernel mismatch"

    # 3) bf16 compute + forced multi-tile grid (weight tiling path with bf16 blocks).
    out_bf16_t = clipcap_prefix_tokens(x, w1, b1, w2, b2, nb_prefix_tokens,
                                       tile_h=128, tile_n=128)
    out_bf16_t = jax.block_until_ready(out_bf16_t)
    assert jnp.allclose(out_bf16_t, ref, atol=3e-2, rtol=3e-2), "bf16 tiled kernel mismatch"

    print("KERNEL_OK")
</pallas_src>

<mosaic_0001>
module attributes {stable_mosaic.version = 11 : i64} {
  func.func @_mlp_tanh_kernel(%arg0: i32, %arg1: i32, %arg2: i32, %arg3: memref<8x128xf32, #tpu.memory_space<vmem>>, %arg4: memref<128x128xf32, #tpu.memory_space<vmem>>, %arg5: memref<1x128xf32, #tpu.memory_space<vmem>>, %arg6: memref<128x128xf32, #tpu.memory_space<vmem>>, %arg7: memref<1x128xf32, #tpu.memory_space<vmem>>, %arg8: memref<8x128xf32, #tpu.memory_space<vmem>>, %arg9: memref<8x128xf32, #tpu.memory_space<vmem>>, %arg10: memref<8x256xf32, #tpu.memory_space<vmem>>) attributes {dimension_semantics = [#tpu.dimension_semantics<parallel>, #tpu.dimension_semantics<arbitrary>, #tpu.dimension_semantics<arbitrary>], iteration_bounds = array<i64: 1, 4, 2>, scalar_prefetch = 0 : i64, scratch_operands = 2 : i64, tpu.core_type = #tpu.core_type<tc>, window_params = [{transform_indices = @transform_0, window_bounds = array<i64: 8, 128>}, {transform_indices = @transform_1, window_bounds = array<i64: 128, 128>}, {transform_indices = @transform_2, window_bounds = array<i64: 1, 128>}, {transform_indices = @transform_3, window_bounds = array<i64: 128, 128>}, {transform_indices = @transform_4, window_bounds = array<i64: 1, 128>}, {transform_indices = @transform_5, window_bounds = array<i64: 8, 128>}]} {
    %c0_i32 = arith.constant 0 : i32
    %0 = arith.cmpi eq, %arg2, %c0_i32 : i32
    %1 = arith.extui %0 : i1 to i32
    %c0_i32_0 = arith.constant 0 : i32
    %2 = arith.cmpi ne, %1, %c0_i32_0 : i32
    scf.if %2 {
      %cst_10 = arith.constant 0.000000e+00 : f32
      %18 = vector.broadcast %cst_10 : f32 to vector<8x128xf32>
      %c0_11 = arith.constant 0 : index
      %c0_12 = arith.constant 0 : index
      %19 = vector.load %arg9[%c0_11, %c0_12] : memref<8x128xf32, #tpu.memory_space<vmem>>, vector<8x128xf32>
      tpu.vector_store %arg9[%c0_11, %c0_12], %18 {strides = array<i32>} : memref<8x128xf32, #tpu.memory_space<vmem>>, vector<8x128xf32>,
    } else {
    }
    %c0_i32_1 = arith.constant 0 : i32
    %3 = arith.cmpi eq, %arg1, %c0_i32_1 : i32
    %4 = arith.extui %3 : i1 to i32
    %c0_i32_2 = arith.constant 0 : i32
    %5 = arith.cmpi ne, %4, %c0_i32_2 : i32
    scf.if %5 {
      %c0_10 = arith.constant 0 : index
      %c0_11 = arith.constant 0 : index
      %18 = vector.load %arg3[%c0_10, %c0_11] : memref<8x128xf32, #tpu.memory_space<vmem>>, vector<8x128xf32>
      %c0_12 = arith.constant 0 : index
      %c0_13 = arith.constant 0 : index
      %19 = vector.load %arg4[%c0_12, %c0_13] : memref<128x128xf32, #tpu.memory_space<vmem>>, vector<128x128xf32>
      %cst_14 = arith.constant dense<0.000000e+00> : vector<8x128xf32>
      %20 = tpu.matmul %18, %19, %cst_14 {dimension_numbers = #tpu.dot_dimension_numbers<[1], [0], [0], [1], [0, 0, 1, 1], [], []>} : vector<8x128xf32>, vector<128x128xf32>, vector<8x128xf32> -> vector<8x128xf32>
      %c0_15 = arith.constant 0 : index
      %c0_16 = arith.constant 0 : index
      %21 = vector.load %arg5[%c0_15, %c0_16] : memref<1x128xf32, #tpu.memory_space<vmem>>, vector<1x128xf32>
      %22 = vector.broadcast %21 : vector<1x128xf32> to vector<8x128xf32>
      %23 = arith.addf %20, %22 : vector<8x128xf32>
      %24 = math.tanh %23 : vector<8x128xf32>
      %c128_i32_17 = arith.constant 128 : i32
      %25 = arith.muli %arg2, %c128_i32_17 : i32
      %26 = tpu.assume_multiple %25, 128 : i32
      %c0_18 = arith.constant 0 : index
      %27 = arith.index_cast %26 : i32 to index
      %28 = vector.load %arg10[%c0_18, %27] : memref<8x256xf32, #tpu.memory_space<vmem>>, vector<8x128xf32>
      tpu.vector_store %arg10[%c0_18, %27], %24 {strides = array<i32>} : memref<8x256xf32, #tpu.memory_space<vmem>>, vector<8x128xf32>,
    } else {
    }
    %c128_i32 = arith.constant 128 : i32
    %6 = arith.muli %arg2, %c128_i32 : i32
    %7 = tpu.assume_multiple %6, 128 : i32
    %c0 = arith.constant 0 : index
    %8 = arith.index_cast %7 : i32 to index
    %9 = vector.load %arg10[%c0, %8] : memref<8x256xf32, #tpu.memory_space<vmem>>, vector<8x128xf32>
    %c0_3 = arith.constant 0 : index
    %c0_4 = arith.constant 0 : index
    %10 = vector.load %arg9[%c0_3, %c0_4] : memref<8x128xf32, #tpu.memory_space<vmem>>, vector<8x128xf32>
    %c0_5 = arith.constant 0 : index
    %c0_6 = arith.constant 0 : index
    %11 = vector.load %arg6[%c0_5, %c0_6] : memref<128x128xf32, #tpu.memory_space<vmem>>, vector<128x128xf32>
    %cst = arith.constant dense<0.000000e+00> : vector<8x128xf32>
    %12 = tpu.matmul %9, %11, %cst {dimension_numbers = #tpu.dot_dimension_numbers<[1], [0], [0], [1], [0, 0, 1, 1], [], []>} : vector<8x128xf32>, vector<128x128xf32>, vector<8x128xf32> -> vector<8x128xf32>
    %13 = arith.addf %10, %12 : vector<8x128xf32>
    %c0_7 = arith.constant 0 : index
    %c0_8 = arith.constant 0 : index
    %14 = vector.load %arg9[%c0_7, %c0_8] : memref<8x128xf32, #tpu.memory_space<vmem>>, vector<8x128xf32>
    tpu.vector_store %arg9[%c0_7, %c0_8], %13 {strides = array<i32>} : memref<8x128xf32, #tpu.memory_space<vmem>>, vector<8x128xf32>,
    %c1_i32 = arith.constant 1 : i32
    %15 = arith.cmpi eq, %arg2, %c1_i32 : i32
    %16 = arith.extui %15 : i1 to i32
    %c0_i32_9 = arith.constant 0 : i32
    %17 = arith.cmpi ne, %16, %c0_i32_9 : i32
    scf.if %17 {
      %c0_10 = arith.constant 0 : index
      %c0_11 = arith.constant 0 : index
      %18 = vector.load %arg9[%c0_10, %c0_11] : memref<8x128xf32, #tpu.memory_space<vmem>>, vector<8x128xf32>
      %c0_12 = arith.constant 0 : index
      %c0_13 = arith.constant 0 : index
      %19 = vector.load %arg7[%c0_12, %c0_13] : memref<1x128xf32, #tpu.memory_space<vmem>>, vector<1x128xf32>
      %20 = vector.broadcast %19 : vector<1x128xf32> to vector<8x128xf32>
      %21 = arith.addf %18, %20 : vector<8x128xf32>
      %c0_14 = arith.constant 0 : index
      %c0_15 = arith.constant 0 : index
      %22 = vector.load %arg8[%c0_14, %c0_15] : memref<8x128xf32, #tpu.memory_space<vmem>>, vector<8x128xf32>
      tpu.vector_store %arg8[%c0_14, %c0_15], %21 {strides = array<i32>} : memref<8x128xf32, #tpu.memory_space<vmem>>, vector<8x128xf32>,
    } else {
    }
    return
  }
  func.func @transform_0(%arg0: i32, %arg1: i32, %arg2: i32) -> (i32, i32) {
    %c0_i32 = arith.constant 0 : i32
    %c0_i32_0 = arith.constant 0 : i32
    return %arg0, %c0_i32 : i32, i32
  }
  func.func @transform_1(%arg0: i32, %arg1: i32, %arg2: i32) -> (i32, i32) {
    %c0_i32 = arith.constant 0 : i32
    %c0_i32_0 = arith.constant 0 : i32
    return %c0_i32, %arg2 : i32, i32
  }
  func.func @transform_2(%arg0: i32, %arg1: i32, %arg2: i32) -> (i32, i32) {
    %c0_i32 = arith.constant 0 : i32
    %c0_i32_0 = arith.constant 0 : i32
    return %c0_i32, %arg2 : i32, i32
  }
  func.func @transform_3(%arg0: i32, %arg1: i32, %arg2: i32) -> (i32, i32) {
    %c0_i32 = arith.constant 0 : i32
    return %arg2, %arg1 : i32, i32
  }
  func.func @transform_4(%arg0: i32, %arg1: i32, %arg2: i32) -> (i32, i32) {
    %c0_i32 = arith.constant 0 : i32
    %c0_i32_0 = arith.constant 0 : i32
    return %c0_i32, %arg1 : i32, i32
  }
  func.func @transform_5(%arg0: i32, %arg1: i32, %arg2: i32) -> (i32, i32) {
    %c0_i32 = arith.constant 0 : i32
    return %arg0, %arg1 : i32, i32
  }
}

</mosaic_0001>

<bundles_post_ra>
// kernel: tpu_custom_call.1
= control target key start
LH: loop header
LB: loop body
LE: loop exit
PB: predicated region body
PF: predicated region fallthrough
CT: control target
= control target key end

     0   :  { %s1804_s0 = inlined_call_operand.hbm [shape: f32[8,128], index: 0, kind: input, shape index: {}]   ;;  %s1805_s1 = inlined_call_operand.hbm [shape: f32[128,256], index: 1, kind: input, shape index: {}]   ;;  %s1806_s2 = inlined_call_operand.vmem [shape: f32[1,256], index: 2, kind: input, shape index: {}]   ;;  %s1807_s3 = inlined_call_operand.hbm [shape: f32[256,512], index: 3, kind: input, shape index: {}]   ;;  %s1808_s4 = inlined_call_operand.vmem [shape: f32[1,512], index: 4, kind: input, shape index: {}]   ;;  %s1809_s5 = inlined_call_operand.hbm [shape: f32[8,512], index: 5, kind: output, shape index: {}]  }
   0x1   :  { %1827 = sst [smem:[#allocation24_spill]] %s1805_s1 }
   0x2   :  { %1828 = sst [smem:[#allocation25_spill]] %s1806_s2 }
   0x3   :  { %1829 = sst [smem:[#allocation26_spill]] %s1808_s4 }
   0x4   :  { %1830 = sst [smem:[#allocation27_spill]] %s1809_s5 }
   0x5   :  { %10 = vsyncpa [#allocation5], 0 }
   0x6   :  { %11 = vsyncpa [#allocation8], 0 }
   0x7   :  { %13 = vsyncpa [#allocation8 + $0x1], 0 }
   0x8   :  { %14 = vsyncpa [#allocation6], 0 }
   0x9   :  { %16 = vsyncpa [#allocation6 + $0x1], 0  ;;  %s1358_s18 = smov 0   ;;  %s1360_s19 = smov 0  }
   0xa   :  { %s1362_s20 = smov 0   ;;  %s1364_s21 = smov 0  }
   0xb   :  { %s1366_s22 = smov 0   ;;  %s1368_s23 = smov 0  }
   0xc   :  { %s1370_s24 = smov 0   ;;  %s1372_s25 = smov 0  }
   0xd   :  { %s1374_s26 = smov 0   ;;  %s1376_s27 = smov 0  }
   0xe   :  { %s1378_s28 = smov 0   ;;  %s1380_s29 = smov 0  }
   0xf   :  { %s1382_s30 = smov 0   ;;  %s1384_s6 = smov 0  }
  0x10 LB: > { %1831 = sst [smem:[#allocation15_spill]] %s1267_s20  ;;  %s34_s7 = sadd.s32 1, %s1303_s29  ;;  %s1311_s6 = sphi %s1384_s6, %s22_s6   ;;  %s1307_s30 = sphi %s1382_s30, %s1889_s30   ;;  %s1303_s29 = sphi %s1380_s29, %s1888_s29   ;;  %s1299_s28 = sphi %s1378_s28, %s1887_s28   ;;  %s1295_s27 = sphi %s1376_s27, %s1886_s27   ;;  %s1291_s26 = sphi %s1374_s26, %s1885_s26   ;;  %s1287_s25 = sphi %s1372_s25, %s1884_s25   ;;  %s1283_s24 = sphi %s1370_s24, %s1883_s24   ;;  %s1279_s23 = sphi %s1368_s23, %s1874_s23   ;;  %s1275_s22 = sphi %s1366_s22, %s1882_s22   ;;  %s1271_s21 = sphi %s1364_s21, %s1881_s21   ;;  %s1267_s20 = sphi %s1362_s20, %s1872_s20   ;;  %s1263_s19 = sphi %s1360_s19, %s1880_s19   ;;  %s1259_s18 = sphi %s1358_s18, %s1879_s18  }
  0x11   : > { %1832 = sst [smem:[#allocation16_spill]] %s1279_s23  ;;  %s74_s8 = sadd.s32 1, %s1291_s26 }
  0x12   : > { %1833 = sst [smem:[#allocation17_spill]] %s1291_s26  ;;  %p1430_p0 = scmp.ge.s32.totalorder %s34_s7, 2 }
  0x13   : > { %p81_p1 = scmp.ne.s32.totalorder %s1291_s26, %s1287_s25  ;;  %p1814_p2 = scmp.eq.s32.totalorder %s1311_s6, 0 }
  0x14   : > { %s1891_s7 = smov (%p1430_p0, %s34_s7), 0  ;;  %p1813_p4 = scmp.lt.s32.totalorder %s1311_s6, 8 }
  0x15   : > { %1835 = sst [smem:[#allocation18_spill]] %s1891_s7  ;;  %p83_p3 = por %p1814_p2, %p81_p1 }
  0x16   : > { %s1446_s10 = ssub.s32 %s1303_s29, %s1891_s7  ;;  %s232_s11 = sand.u32 1, %s1311_s6  }
  0x17   : > { %p72_p5 = scmp.eq.s32.totalorder %s1446_s10, 0  ;;  %s234_s12 = sand.u32 1, %s1291_s26  }
  0x18   : > { %s738_s13 = sshll.u32 %s1303_s29, 7  ;;  %s737_s15 = sshll.u32 %s234_s12, 7 }
  0x19   : > { %s1453_s14 = scalar_select %p72_p5, %s1291_s26, %s74_s8  }
  0x1a   : > { %s1837_s1 = sld [smem:[#allocation24_spill]]  ;;  %p1462_p6 = pnand %p1813_p4, %p83_p3 }
  0x1b   : > { %1836 = sst [smem:[#allocation19_spill]] %s1453_s14  ;;  %s236_s4 = scalar_lea.vmem [#allocation7], %s737_s15 }
  0x1c   : > { %s242_s8 = sshll.u32 %s236_s4, 4  ;;  %s1468_s12 = scalar_lea.sflag [#allocation8], %s232_s11  ;;  %s1466_s8 = int_to_ptr.vmem [resolvable:$true] %s242_s8 }
  0x1d   : > { %p1071_p8 = pneg %p1462_p6 }
  0x20   : > { %s1458_s5 = scalar_lea.hbm %s1837_s1, %s738_s13  ;;  %s1074_s14 = scalar_lea.hbm %s1837_s1, 4096 }
  0x21   : > { %s1069_s16 = scalar_lea.hbm %s1458_s5, 2048  ;;  %p1075_p11 = scmp.lt.u32.totalorder %s1458_s5, %s1837_s1 }
  0x22   : > { %p1070_p7 = scmp.ne.s32.totalorder %s1458_s5, %s1069_s16  ;;  %p1076_p12 = scmp.lt.u32.totalorder %s1074_s14, %s1069_s16 }
  0x23   : > { %p1078_p1 = scmp.lt.u32.totalorder %s1069_s16, %s1458_s5 }
  0x24   : > { %p1072_p9 = pnand %p1071_p8, %p1070_p7  ;;  %p1077_p13 = por %p1076_p12, %p1075_p11 }
  0x26   : > { %p1073_p10 = pneg %p1072_p9  ;;  %p1079_p3 = por %p1078_p1, %p1077_p13 }
  0x28   : > { %p1080_p5 = pnand %p1079_p3, %p1073_p10 }
  0x2a   : > { %1083 = shalt.err (!%p1080_p5)
}
  0x2b   : > { %s1084_s4 = scalar_lea.vmem %s1466_s8, 2048  ;;  %s1313_s11 = smov [#allocation7]  }
  0x2c   : > { %p1085_p7 = scmp.ne.s32.totalorder %s1466_s8, %s1084_s4  ;;  %s1089_s15 = sshll.u32 %s1313_s11, 4  ;;  %s1090_s15 = int_to_ptr.vmem [resolvable:$false] %s1089_s15 }
  0x2d   : > { %s1091_s2 = scalar_lea.vmem %s1090_s15, 4096  ;;  %p1092_p2 = scmp.lt.s32.totalorder %s1466_s8, %s1090_s15 }
  0x2e   : > { %p1087_p9 = pnand %p1085_p7, %p1071_p8  ;;  %p1093_p11 = scmp.lt.s32.totalorder %s1091_s2, %s1084_s4 }
  0x30   : > { %p1088_p4 = pneg %p1087_p9  ;;  %p1094_p12 = por %p1093_p11, %p1092_p2 }
  0x32   : > { %p1095_p13 = pnand %p1094_p12, %p1088_p4 }
  0x34   : > { %1098 = shalt.err (!%p1095_p13)
}
  0x35   : > { %s1314_s26 = smov 256   ;;  %s1816_s14 = smov 128  }
  0x36   : > { %s1817_s16 = smov 8   ;;  %s1499_s13 = sadd.s32 4294967295, %s1311_s6  }
  0x37   : > { %931 = dma.hbm_to_vmem [thread:$0]  (!%p1462_p6), %s1458_s5, 2048, %s1466_s8, %s1468_s12, %s1314_s26, %s1816_s14, %s1817_s16  }
  0x38   : > { %s733_s17 = sadd.s32 4294967294, %s1311_s6   ;;  %s37_s4 = sadd.s32 1, %s1307_s30 }
  0x39   : > { %p87_p2 = scmp.ne.s32.totalorder %s1287_s25, %s1283_s24  ;;  %s1893_s4 = smov (!%p1430_p0, %s37_s4), %s1307_s30 }
  0x3a   : > { %p1815_p4 = scmp.eq.s32.totalorder %s1499_s13, 0  ;;  %s128_s7 = sadd.s32 1, %s1279_s23 }
  0x3b   : > { %p39_p6 = scmp.ge.s32.totalorder %s1893_s4, 4  ;;  %p135_p8 = scmp.ne.s32.totalorder %s1279_s23, %s1275_s22 }
  0x3c   : > { %p1514_p10 = por %p1815_p4, %p87_p2  ;;  %p141_p1 = scmp.ne.s32.totalorder %s1275_s22, %s1271_s21 }
  0x3d   : > { %s1895_s4 = smov (%p39_p6, %s1893_s4), 0  ;;  %p1841_p3 = scmp.eq.s32.totalorder %s1311_s6, 0 }
  0x3e   : > { %s1839_s5 = scalar_select %p1514_p10, 1, 0 }
  0x3f   : > { %1840 = sst [smem:[#allocation20_spill]] %s1895_s4  ;;  %p1524_p0 = por %p135_p8, %p1841_p3 }
  0x40   : > { %p1530_p5 = por %p141_p1, %p1815_p4  ;;  %s124_s8 = ssub.s32 %s1307_s30, %s1895_s4 }
  0x41   : > { %s182_s11 = sadd.s32 1, %s1267_s20  ;;  %s125_s15 = sor.u32 %s124_s8, %s1446_s10 }
  0x42   : > { %s1843_s9 = scalar_select %p1530_p5, 1, 0 }
  0x43   : > { %p180_p7 = scmp.eq.s32.totalorder %s124_s8, 0  ;;  %p126_p9 = scmp.eq.s32.totalorder %s125_s15, 0 }
  0x44   : > { %p192_p11 = scmp.ne.s32.totalorder %s1267_s20, %s1263_s19  ;;  %p193_p12 = scmp.eq.s32.totalorder %s1499_s13, 7 }
  0x45   : > { %s1541_s21 = scalar_select %p180_p7, %s1267_s20, %s182_s11  }
  0x46   : > { %s1544_s2 = scalar_select %p126_p9, %s1279_s23, %s128_s7  }
  0x47   : > { %1844 = sst [smem:[#allocation21_spill]] %s1541_s21  ;;  %p198_p13 = scmp.ne.s32.totalorder %s1263_s19, %s1259_s18 }
  0x48   : > { %1845 = sst [smem:[#allocation22_spill]] %s1544_s2  ;;  %p199_p2 = scmp.eq.s32.totalorder %s733_s17, 7 }
  0x49   : > { %p734_p6 = scmp.ge.s32.totalorder %s1311_s6, 1  ;;  %p1550_p8 = por %p193_p12, %p192_p11 }
  0x4a   : > { %p206_p1 = scmp.lt.s32.totalorder %s1311_s6, 9  ;;  %p1555_p3 = por %p199_p2, %p198_p13 }
  0x4b   : > { %s1846_s26 = scalar_select %p1550_p8, 1, 0 }
  0x4c   : > { %s1847_s10 = scalar_select %p1555_p3, 1, 0 }
  0x4d   : > { %p1559_p7 = pnand %p734_p6, %p206_p1  ;;  %s1317_s7 = smov [#allocation4]  }
  0x4e   : > { %1848 = sst [smem:[#allocation23_spill]] %s1847_s10  ;;  %s221_s11 = sshll.u32 %s1317_s7, 4  ;;  %s222_s11 = int_to_ptr.vmem [resolvable:$true] %s221_s11 }
  0x4f   : > { %s1849_s8 = scalar_select %p1559_p7, 1, 0 }
  0x50   : > { %p1850_p9 = scmp.lt.s32.totalorder %s1311_s6, 8  ;;  %p924_p11 = pneg %p1559_p7 }
  0x51   : > { %s260_s15 = sand.u32 1, %s1279_s23   ;;  %p1852_p12 = scmp.eq.s32.totalorder %s1499_s13, 0 }
  0x52   : > { %p1567_p4 = pnand %p1850_p9, %p1524_p0  ;;  %s739_s16 = sshll.u32 %s260_s15, 7 }
  0x53   : > { %p1576_p13 = pnand %p924_p11, %p1852_p12  ;;  %s761_s1 = sshll.u32 %s1303_s29, 6 }
  0x54   : > { %s1851_s17 = scalar_select %p1567_p4, 1, 0 }
  0x55   : > { %s268_s4 = sadd.s32 %s1307_s30, %s761_s1  ;;  %s1099_s2 = scalar_lea.hbm %s1804_s0, 128 }
  0x56   : > { %p1100_p0 = scmp.ne.s32.totalorder %s1804_s0, %s1099_s2  ;;  %p1101_p2 = pneg %p1576_p13 }
  0x57   : > { %p1106_p9 = scmp.lt.u32.totalorder %s1099_s2, %s1804_s0 }
  0x58   : > { %p1102_p6 = pnand %p1101_p2, %p1100_p0 }
  0x5a   : > { %p1103_p1 = pneg %p1102_p6 }
  0x5c   : > { %p1108_p11 = pnand %p1106_p9, %p1103_p1 }
  0x5e   : > { %1111 = shalt.err (!%p1108_p11)
}
  0x5f   : > { %s1112_s15 = scalar_lea.vmem %s222_s11, 128  ;;  %p1120_p5 = scmp.lt.s32.totalorder %s222_s11, %s222_s11 }
  0x60   : > { %p1113_p12 = scmp.ne.s32.totalorder %s222_s11, %s1112_s15  ;;  %p1121_p10 = scmp.lt.s32.totalorder %s1112_s15, %s1112_s15 }
  0x62   : > { %p1115_p3 = pnand %p1113_p12, %p1101_p2  ;;  %p1122_p7 = por %p1121_p10, %p1120_p5 }
  0x64   : > { %p1116_p8 = pneg %p1115_p3 }
  0x66   : > { %p1123_p4 = pnand %p1122_p7, %p1116_p8 }
  0x68   : > { %1126 = shalt.err (!%p1123_p4)
}
  0x69   : > { %927 = dma.hbm_to_vmem [thread:$0]  (!%p1576_p13), %s1804_s0, 128, %s222_s11, [#allocation5]  }
  0x6a   : > { %s742_s23 = sshll.u32 %s268_s4, 7  ;;  %s262_s21 = scalar_lea.vmem [#allocation9], %s739_s16 }
  0x6b   : > { %s271_s2 = sshll.u32 %s262_s21, 4  ;;  %s1601_s24 = scalar_lea.hbm %s1807_s3, %s742_s23  ;;  %s1603_s2 = int_to_ptr.vmem [resolvable:$true] %s271_s2 }
  0x6c   : > { %s1127_s14 = scalar_lea.hbm %s1601_s24, 2048  ;;  %p1854_p10 = scmp.ne.s32.totalorder %s1851_s17, 0 }
  0x6d   : > { %p1128_p4 = scmp.ne.s32.totalorder %s1601_s24, %s1127_s14  ;;  %s1132_s11 = scalar_lea.hbm %s1807_s3, 16384 }
  0x6e   : > { %p1129_p5 = pneg %p1854_p10  ;;  %p1133_p7 = scmp.lt.u32.totalorder %s1601_s24, %s1807_s3 }
  0x6f   : > { %p1134_p13 = scmp.lt.u32.totalorder %s1132_s11, %s1127_s14  ;;  %p1136_p2 = scmp.lt.u32.totalorder %s1127_s14, %s1601_s24 }
  0x70   : > { %p1130_p8 = pnand %p1129_p5, %p1128_p4 }
  0x71   : > { %p1135_p0 = por %p1134_p13, %p1133_p7 }
  0x72   : > { %p1131_p3 = pneg %p1130_p8 }
  0x73   : > { %p1137_p6 = por %p1136_p2, %p1135_p0 }
  0x75   : > { %p1138_p1 = pnand %p1137_p6, %p1131_p3 }
  0x77   : > { %1141 = shalt.err (!%p1138_p1)
}
  0x78   : > { %s1142_s20 = scalar_lea.vmem %s1603_s2, 2048  ;;  %s1318_s23 = smov [#allocation9]  }
  0x79   : > { %p1143_p9 = scmp.ne.s32.totalorder %s1603_s2, %s1142_s20  ;;  %s1147_s21 = sshll.u32 %s1318_s23, 4  ;;  %s1148_s21 = int_to_ptr.vmem [resolvable:$false] %s1147_s21 }
  0x7a   : > { %s1149_s10 = scalar_lea.vmem %s1148_s21, 4096  ;;  %p1150_p4 = scmp.lt.s32.totalorder %s1603_s2, %s1148_s21 }
  0x7b   : > { %p1145_p11 = pnand %p1143_p9, %p1129_p5  ;;  %p1151_p8 = scmp.lt.s32.totalorder %s1149_s10, %s1142_s20 }
  0x7d   : > { %p1146_p12 = pneg %p1145_p11  ;;  %p1152_p7 = por %p1151_p8, %p1150_p4 }
  0x7f   : > { %p1153_p13 = pnand %p1152_p7, %p1146_p12 }
  0x81   : > { %1156 = shalt.err (!%p1153_p13)
}
  0x82   : > { %s1319_s7 = smov 512   ;;  %s1855_s14 = smov 8  }
  0x83   : > { %s1856_s16 = smov 128   ;;  %p1857_p5 = scmp.ne.s32.totalorder %s1849_s8, 0 }
  0x84   : > { %934 = dma.hbm_to_vmem [thread:$0]  (!%p1854_p10), %s1601_s24, 2048, %s1603_s2, %s1468_s12, %s1319_s7, %s1856_s16, %s1855_s14  }
  0x85   : > { %289 = sbr.rel (%p1857_p5) target bundleno = 710 (0x2c6), region = 40  ;;  %p1858_p3 = scmp.eq.s32.totalorder (!%p1857_p5), %s1499_s13, 0 }
  0x8c   : > { %1242 = dma.done.wait (%p1858_p3), [#allocation5], 128   ;;  %p1859_p0 = pmov %p1858_p3 }
  0x8d   : > { %s295_s4 = sand.u32 1, %s1499_s13   ;;  %s297_s17 = sand.u32 1, %s1287_s25  }
  0x8e   : > { %1244 = vsyncadd (%p1859_p0), [#allocation5], 4294967168  ;;  %s745_s11 = sshll.u32 %s297_s17, 7  ;;  %s296_s15 = scalar_lea.sflag [#allocation8], %s295_s4 }
  0x8f   : > { %s1641_s1 = scalar_lea.vmem [#allocation7], %s745_s11  ;;  %p1860_p2 = scmp.ne.s32.totalorder %s1839_s5, 0 }
  0x91   : > { %1246 = dma.done.wait (%p1860_p2), %s296_s15, 2048  }
  0x92   : > { %1248 = vsyncadd (%p1860_p2), %s296_s15, 4294965248  ;;  %s306_s12 = sand.u32 1, %s1275_s22   ;;  %p1861_p10 = scmp.ne.s32.totalorder %s1843_s9, 0 }
  0x93   : > { %s746_s8 = sshll.u32 %s306_s12, 7 }
  0x94   : > { %s1648_s2 = scalar_lea.vmem [#allocation9], %s746_s8 }
  0x95   : > { %1250 = dma.done.wait (%p1861_p10), %s296_s15, 2048  }
  0x96   : > { %1252 = vsyncadd (%p1861_p10), %s296_s15, 4294965248  ;;  %s343_s13 = sand.u32 1, %s1263_s19   ;;  %p346_p6 = scmp.lt.s32.totalorder %s1295_s27, 1 }
  0x97   : > { %s1658_s5 = sshll.u32 %s343_s13, 3  ;;  %p350_p1 = scmp.lt.s32.totalorder %s1299_s28, 3 }
  0x98   : > { %s1662_s24 = scalar_select %p346_p6, %s1295_s27, 1 }
  0x99   : > { %s1665_s20 = scalar_select %p350_p1, %s1299_s28, 3 }
  0x9a   : > { %s1862_s21 = sld [smem:[#allocation25_spill]]  ;;  %s1863_s16 = sld [smem:[#allocation26_spill]] }
  0x9b   : > { %s345_s17 = scalar_lea.vmem [#allocation10], %s1658_s5  ;;  %p748_p9 = scmp.ne.s32.totalorder %s1295_s27, 0 }
  0x9c   : > { %v1320_v0 = vmov (!%p748_p9), 0.0  }
  0x9d   : > { %356 = sbr.rel (%p748_p9) target bundleno = 164 (0xa4), region = 56  ;;  %357 = vst [vmem:[#allocation2] sm:$0xff] (!%p748_p9), %v1320_v0 }
  0xa0   : > { %s348_s10 = scalar_lea.vmem %s1862_s21, %s1662_s24  ;;  %s352_s4 = scalar_lea.vmem %s1863_s16, %s1665_s20 }
  0xa4 PF: > { %p749_p11 = scmp.ne.s32.totalorder %s1299_s28, 0 }
  0xa5   : > { %v363_v1 = vld [vmem:[%s1641_s1] sm:$0xff] (!%p749_p11)  ;;  %v364_v2 = vld [vmem:[%s1641_s1 + $0x8] sm:$0xff] (!%p749_p11)  ;;  %v365_v3 = vld [vmem:[%s1641_s1 + $0x10] sm:$0xff] (!%p749_p11)  ;;  %v1321_v4 = vmov (!%p749_p11), 0.0|0.0   ;;  %vm1322_vm0 = vmmov (!%p749_p11), 0   ;;  %v1323_v7 = vmov (!%p749_p11), 0.0  }
  0xa6   : > { %361 = sbr.rel (%p749_p11) target bundleno = 425 (0x1a9), region = 60  ;;  %866 = vmatprep.subr.bf16.mxu0 (!%p749_p11), %v1321_v4  ;;  %v867_v5 = vpack.c.bf16 (!%p749_p11), %v364_v2, %v363_v1  ;;  %v366_v6 = vld [vmem:[%s1641_s1 + $0x18] sm:$0xff] (!%p749_p11)  ;;  %828 = vmatprep.mubr.msk.f32.mxu0 (!%p749_p11), %vm1322_vm0, %v1323_v7  ;;  %v367_v9 = vld [vmem:[%s1641_s1 + $0x20] sm:$0xff] (!%p749_p11)  ;;  %v368_v10 = vld [vmem:[%s1641_s1 + $0x28] sm:$0xff] (!%p749_p11)  ;;  %s751_s8 = sshll.u32 (!%p749_p11), %s1295_s27, 7 }
  0xa7   : > { %v870_v8 = vpack.c.bf16 (!%p749_p11), %v366_v6, %v365_v3  ;;  %v873_v11 = vpack.c.bf16 (!%p749_p11), %v368_v10, %v367_v9  ;;  %v369_v12 = vld [vmem:[%s1641_s1 + $0x30] sm:$0xff] (!%p749_p11)  ;;  %v370_v13 = vld [vmem:[%s1641_s1 + $0x38] sm:$0xff] (!%p749_p11)  ;;  %v371_v15 = vld [vmem:[%s1641_s1 + $0x40] sm:$0xff] (!%p749_p11)  ;;  %s458_s9 = sshra.s32 (!%p749_p11), %s751_s8, 7 }
  0xa8   : > { %868 = vmatpush3.bf16.msra.mxu0 (!%p749_p11), %v867_v5  ;;  %v876_v14 = vpack.c.bf16 (!%p749_p11), %v370_v13, %v369_v12  ;;  %v372_v16 = vld [vmem:[%s1641_s1 + $0x48] sm:$0xff] (!%p749_p11)  ;;  %v373_v18 = vld [vmem:[%s1641_s1 + $0x50] sm:$0xff] (!%p749_p11)  ;;  %v374_v19 = vld [vmem:[%s1641_s1 + $0x58] sm:$0xff] (!%p749_p11)  ;;  %s752_s23 = sshll.u32 (!%p749_p11), %s458_s9, 3 }
  0xa9   : > { %869 = vmatprep.subr.bf16.mxu0 (!%p749_p11), %v1321_v4  ;;  %v879_v17 = vpack.c.bf16 (!%p749_p11), %v372_v16, %v371_v15  ;;  %v882_v20 = vpack.c.bf16 (!%p749_p11), %v374_v19, %v373_v18  ;;  %v375_v21 = vld [vmem:[%s1641_s1 + $0x60] sm:$0xff] (!%p749_p11)  ;;  %v376_v22 = vld [vmem:[%s1641_s1 + $0x68] sm:$0xff] (!%p749_p11)  ;;  %v377_v24 = vld [vmem:[%s1641_s1 + $0x70] sm:$0xff] (!%p749_p11) }
  0xaa   : > { %v885_v23 = vpack.c.bf16 (!%p749_p11), %v376_v22, %v375_v21  ;;  %v378_v25 = vld [vmem:[%s1641_s1 + $0x78] sm:$0xff] (!%p749_p11)  ;;  %v750_v28 = vld [vmem:[%s348_s10] ss:$0 sm:$0xff] (!%p749_p11)  ;;  %s461_s1 = scalar_lea.vmem (!%p749_p11), [#allocation3], %s752_s23 }
  0xab   : > { %v888_v26 = vpack.c.bf16 (!%p749_p11), %v378_v25, %v377_v24  ;;  %v362_v27 = vld [vmem:[#allocation4] sm:$0xff] (!%p749_p11) }
  0xac   : > { %871 = vmatpush3.bf16.msra.mxu0 (!%p749_p11), %v870_v8 }
  0xad   : > { %872 = vmatprep.subr.bf16.mxu0 %v1321_v4 }
  0xb0   : > { %874 = vmatpush3.bf16.msra.mxu0 %v873_v11 }
  0xb1   : > { %875 = vmatprep.subr.bf16.mxu0 %v1321_v4 }
  0xb4   : > { %877 = vmatpush3.bf16.msra.mxu0 %v876_v14 }
  0xb5   : > { %878 = vmatprep.subr.bf16.mxu0 %v1321_v4 }
  0xb8   : > { %880 = vmatpush3.bf16.msra.mxu0 %v879_v17 }
  0xb9   : > { %881 = vmatprep.subr.bf16.mxu0 %v1321_v4 }
  0xbc   : > { %883 = vmatpush3.bf16.msra.mxu0 %v882_v20 }
  0xbd   : > { %884 = vmatprep.subr.bf16.mxu0 %v1321_v4 }
  0xc0   : > { %886 = vmatpush3.bf16.msra.mxu0 %v885_v23 }
  0xc1   : > { %887 = vmatprep.subr.bf16.mxu0 %v1321_v4 }
  0xc4   : > { %889 = vmatpush3.bf16.msra.mxu0 %v888_v26 }
  0xc7   : > { %829 = vmatmul.mubr.f32.vlgmr.msra.gmra.mrb[0].mxu0 %v362_v27 }
 0x19a   : > { %v452_v29 = vpop.f32.mrb[0].mxu0 }
 0x19b   : > { %v453_v30 = vadd.f32 %v750_v28, %v452_v29  ;;  %v830_v31 = vpop.f32.mrb[1].mxu0 }
 0x19d   : > { %1067 = vtanh.f32 %v453_v30 }
 0x1a7   : > { %v1068_v32 = vpop.eup %1067 }
 0x1a8   : > { %462 = vst [vmem:[%s461_s1] sm:$0xff] %v1068_v32 }
 0x1a9 PF: > { %v470_v33 = vld [vmem:[%s1648_s2] sm:$0xff]  ;;  %v471_v34 = vld [vmem:[%s1648_s2 + $0x8] sm:$0xff]  ;;  %v472_v35 = vld [vmem:[%s1648_s2 + $0x10] sm:$0xff]  ;;  %v1324_v36 = vmov 0.0|0.0   ;;  %vm1325_vm1 = vmmov 0   ;;  %v1326_v39 = vmov 0.0  }
 0x1aa   : > { %890 = vmatprep.subr.bf16.mxu0 %v1324_v36  ;;  %v891_v37 = vpack.c.bf16 %v471_v34, %v470_v33  ;;  %v473_v38 = vld [vmem:[%s1648_s2 + $0x18] sm:$0xff]  ;;  %863 = vmatprep.mubr.msk.f32.mxu0 %vm1325_vm1, %v1326_v39  ;;  %v474_v41 = vld [vmem:[%s1648_s2 + $0x20] sm:$0xff]  ;;  %v475_v42 = vld [vmem:[%s1648_s2 + $0x28] sm:$0xff]  ;;  %s753_s24 = sshll.u32 %s1295_s27, 7  ;;  %p755_p12 = scmp.ne.s32.totalorder %s1295_s27, 1 }
 0x1ab   : > { %v894_v40 = vpack.c.bf16 %v473_v38, %v472_v35  ;;  %v897_v43 = vpack.c.bf16 %v475_v42, %v474_v41  ;;  %v476_v44 = vld [vmem:[%s1648_s2 + $0x30] sm:$0xff]  ;;  %v477_v45 = vld [vmem:[%s1648_s2 + $0x38] sm:$0xff]  ;;  %v478_v47 = vld [vmem:[%s1648_s2 + $0x40] sm:$0xff]  ;;  %s464_s21 = sshra.s32 %s753_s24, 7 }
 0x1ac   : > { %892 = vmatpush3.bf16.msra.mxu0 %v891_v37  ;;  %v900_v46 = vpack.c.bf16 %v477_v45, %v476_v44  ;;  %v479_v48 = vld [vmem:[%s1648_s2 + $0x48] sm:$0xff]  ;;  %v480_v50 = vld [vmem:[%s1648_s2 + $0x50] sm:$0xff]  ;;  %v481_v51 = vld [vmem:[%s1648_s2 + $0x58] sm:$0xff]  ;;  %s754_s10 = sshll.u32 %s464_s21, 3 }
 0x1ad   : > { %893 = vmatprep.subr.bf16.mxu0 %v1324_v36  ;;  %v903_v49 = vpack.c.bf16 %v479_v48, %v478_v47  ;;  %v906_v52 = vpack.c.bf16 %v481_v51, %v480_v50  ;;  %v482_v53 = vld [vmem:[%s1648_s2 + $0x60] sm:$0xff]  ;;  %v483_v54 = vld [vmem:[%s1648_s2 + $0x68] sm:$0xff]  ;;  %v484_v56 = vld [vmem:[%s1648_s2 + $0x70] sm:$0xff]  ;;  %s467_s7 = scalar_lea.vmem [#allocation3], %s754_s10 }
 0x1ae   : > { %v909_v55 = vpack.c.bf16 %v483_v54, %v482_v53  ;;  %v485_v57 = vld [vmem:[%s1648_s2 + $0x78] sm:$0xff]  ;;  %v469_v60 = vld [vmem:[#allocation2] sm:$0xff] }
 0x1af   : > { %v912_v58 = vpack.c.bf16 %v485_v57, %v484_v56  ;;  %v468_v59 = vld [vmem:[%s467_s7] sm:$0xff] }
 0x1b0   : > { %895 = vmatpush3.bf16.msra.mxu0 %v894_v40  ;;  %v756_v1 = vld [vmem:[%s352_s4] ss:$0 sm:$0xff] (!%p755_p12) }
 0x1b1   : > { %896 = vmatprep.subr.bf16.mxu0 %v1324_v36 }
 0x1b4   : > { %898 = vmatpush3.bf16.msra.mxu0 %v897_v43 }
 0x1b5   : > { %899 = vmatprep.subr.bf16.mxu0 %v1324_v36 }
 0x1b8   : > { %901 = vmatpush3.bf16.msra.mxu0 %v900_v46 }
 0x1b9   : > { %902 = vmatprep.subr.bf16.mxu0 %v1324_v36 }
 0x1bc   : > { %904 = vmatpush3.bf16.msra.mxu0 %v903_v49 }
 0x1bd   : > { %905 = vmatprep.subr.bf16.mxu0 %v1324_v36 }
 0x1c0   : > { %907 = vmatpush3.bf16.msra.mxu0 %v906_v52 }
 0x1c1   : > { %908 = vmatprep.subr.bf16.mxu0 %v1324_v36 }
 0x1c4   : > { %910 = vmatpush3.bf16.msra.mxu0 %v909_v55 }
 0x1c5   : > { %911 = vmatprep.subr.bf16.mxu0 %v1324_v36 }
 0x1c8   : > { %913 = vmatpush3.bf16.msra.mxu0 %v912_v58 }
 0x1cb   : > { %864 = vmatmul.mubr.f32.vlgmr.msra.gmra.mrb[0].mxu0 %v468_v59 }
 0x29b   : > { %561 = sbr.rel (%p755_p12) target bundleno = 684 (0x2ac), region = 64 }
 0x29e   : > { %v552_v61 = vpop.f32.mrb[0].mxu0 }
 0x29f   : > { %v556_v62 = vadd.f32 %v552_v61, %v469_v60  ;;  %v865_v63 = vpop.f32.mrb[1].mxu0 }
 0x2a1   : > { %557 = vst [vmem:[#allocation2] sm:$0xff] %v556_v62 }
 0x2a8   : > { %v562_v0 = vld [vmem:[#allocation2] sm:$0xff] }
 0x2a9   : > { %v570_v2 = vadd.f32 %v756_v1, %v562_v0 }
 0x2ab   : > { %571 = vst [vmem:[%s345_s17] sm:$0xff] %v570_v2 }
 0x2ac PF: > { %s758_s11 = sshll.u32 %s1299_s28, 7  ;;  %s1866_s12 = sld [smem:[#allocation27_spill]] }
 0x2ad   : > { %s588_s9 = sshll.u32 %s345_s17, 4  ;;  %s573_s20 = scalar_lea.sflag [#allocation6], %s343_s13  ;;  %s589_s9 = int_to_ptr.vmem [resolvable:$true] %s588_s9 }
 0x2ae   : > { %s1157_s4 = scalar_lea.vmem %s589_s9, 128  ;;  %p1867_p8 = scmp.ne.s32.totalorder %s1846_s26, 0 }
 0x2af   : > { %p1158_p4 = scmp.ne.s32.totalorder %s589_s9, %s1157_s4  ;;  %s1327_s23 = smov [#allocation10]  }
 0x2b0   : > { %s1161_s1 = sshll.u32 %s1327_s23, 4  ;;  %s1162_s1 = int_to_ptr.vmem [resolvable:$false] %s1161_s1 }
 0x2b1   : > { %p1159_p7 = pnand %p1158_p4, %p1867_p8  ;;  %s1163_s24 = scalar_lea.vmem %s1162_s1, 256 }
 0x2b2   : > { %s1729_s8 = scalar_lea.hbm %s1866_s12, %s758_s11  ;;  %p1164_p5 = scmp.lt.s32.totalorder %s589_s9, %s1162_s1 }
 0x2b3   : > { %p1160_p13 = pneg %p1159_p7  ;;  %p1165_p3 = scmp.lt.s32.totalorder %s1163_s24, %s1157_s4 }
 0x2b5   : > { %p1166_p0 = por %p1165_p3, %p1164_p5 }
 0x2b7   : > { %p1167_p2 = pnand %p1166_p0, %p1160_p13 }
 0x2b9   : > { %1170 = shalt.err (!%p1167_p2)
}
 0x2ba   : > { %s1171_s28 = scalar_lea.hbm %s1729_s8, 128  ;;  %s1175_s17 = scalar_lea.hbm %s1866_s12, 512 }
 0x2bb   : > { %p1172_p10 = scmp.ne.s32.totalorder %s1729_s8, %s1171_s28  ;;  %p1176_p9 = scmp.lt.u32.totalorder %s1729_s8, %s1866_s12 }
 0x2bc   : > { %p1177_p11 = scmp.lt.u32.totalorder %s1175_s17, %s1171_s28  ;;  %p1179_p4 = scmp.lt.u32.totalorder %s1171_s28, %s1729_s8 }
 0x2bd   : > { %p1173_p6 = pnand %p1172_p10, %p1867_p8 }
 0x2be   : > { %p1178_p12 = por %p1177_p11, %p1176_p9 }
 0x2bf   : > { %p1174_p1 = pneg %p1173_p6 }
 0x2c0   : > { %p1180_p7 = por %p1179_p4, %p1178_p12 }
 0x2c2   : > { %p1181_p13 = pnand %p1180_p7, %p1174_p1 }
 0x2c4   : > { %1184 = shalt.err (!%p1181_p13)
}
 0x2c5   : > { %922 = dma.vmem_to_hbm [thread:$0]  (%p1867_p8), %s589_s9, 128, %s1729_s8, %s573_s20  }
 0x2c6 PF: > { %s1868_s7 = sld [smem:[#allocation23_spill]]  ;;  %p942_p5 = scmp.ge.s32.totalorder %s1311_s6, 2 }
 0x2c7   : > { %s600_s14 = sand.u32 1, %s1259_s18  }
 0x2c8   : > { %s601_s16 = scalar_lea.sflag [#allocation6], %s600_s14 }
 0x2cc   : > { %p1869_p3 = scmp.ne.s32.totalorder %s1868_s7, 0 }
 0x2ce   : > { %p936_p0 = pnand %p942_p5, %p1869_p3 }
 0x2d0   : > { %1254 = dma.done.wait (!%p936_p0), %s601_s16, 128  }
 0x2d1   : > { %1256 = vsyncadd (!%p936_p0), %s601_s16, 4294967168  ;;  %s22_s6 = sadd.s32 1, %s1311_s6   ;;  %s1871_s26 = sld [smem:[#allocation15_spill]] }
 0x2d2   : > { %p1757_p2 = scmp.ge.s32.totalorder %s22_s6, 10   ;;  %s1872_s20 = sld [smem:[#allocation21_spill]] }
 0x2d3   : > { %s1873_s11 = sld [smem:[#allocation16_spill]]  ;;  %s1874_s23 = sld [smem:[#allocation22_spill]] }
 0x2d4   : > { %s1875_s15 = sld [smem:[#allocation17_spill]]  ;;  %s1876_s27 = sld [smem:[#allocation19_spill]] }
 0x2d5   : > { %s1877_s8 = sld [smem:[#allocation18_spill]]  ;;  %s1878_s9 = sld [smem:[#allocation20_spill]] }
 0x2d6   : > { %s1879_s18 = smov %s1263_s19  ;;  %s1881_s21 = smov %s1275_s22 }
 0x2d7   : > { %s1880_s19 = smov %s1871_s26  ;;  %s1883_s24 = smov %s1287_s25 }
 0x2d8   : > { %s1887_s28 = smov %s1307_s30  ;;  %21 = sbr.rel (!%p1757_p2) target bundleno = 16 (0x10), region = 122 }
 0x2d9   : > { %s1882_s22 = smov %s1873_s11 }
 0x2da   : > { %s1884_s25 = smov %s1875_s15  ;;  %s1885_s26 = smov %s1876_s27 }
 0x2db   : > { %s1886_s27 = smov %s1303_s29  ;;  %s1888_s29 = smov %s1877_s8 }
 0x2dc   : > { %s1889_s30 = smov %s1878_s9 }
 0x2df   :  { %606 = vsyncpa [#allocation5], 1 }
 0x2e0   :  { %608 = vsyncpa [#allocation5 + $0x1], 1 }
 0x2e1   :  { %609 = vsyncpa [#allocation8], 1 }
 0x2e2   :  { %611 = vsyncpa [#allocation8 + $0x1], 1 }
 0x2e3   :  { %612 = vsyncpa [#allocation6], 1 }
 0x2e4   :  { %614 = vsyncpa [#allocation6 + $0x1], 1 }

</bundles_post_ra>
